<compile_context>
chip_gen: v5e
topology: v5e:2x2
jax: 0.10.0
libtpu: 0.0.40
codegen_flags: <defaults>
</compile_context>

<pallas_src>
import functools

import jax
import jax.numpy as jnp
from jax.experimental import pallas as pl
from jax.experimental.pallas import tpu as pltpu


def _round_up(a, b):
    return -(-a // b) * b


def _sublane_tile(dtype):
    # Trailing-two-dim tiling: 8 sublanes for 4-byte, 16 for 2-byte, 32 for 1-byte.
    return max(8, 32 // jnp.dtype(dtype).itemsize)


def _vmem_budget():
    """(per-input-buffer byte budget, default vmem_limit_bytes, min parallel grid steps)."""
    cap = None
    try:
        cap = int(getattr(pltpu.get_tpu_info(), "vmem_capacity_bytes", 0)) or None
    except Exception:  # no query available: be conservative (assume small-VMEM part)
        cap = None
    if cap is None or cap <= 64 * 1024 * 1024:
        # v7x-class: 64 MiB VMEM per TC, 2 TCs/chip -> smaller tiles, >=4 parallel steps.
        return 20 * 1024 * 1024, 48 * 1024 * 1024, 4
    # v5e / v6e-class: 128 MiB VMEM, 1 TC.
    return 32 * 1024 * 1024, 96 * 1024 * 1024, 1


def _pool_kernel_full(x_ref, o_ref, *, c, inv_hw):
    """One grid step reduces the full H*W extent for TN batch rows."""
    x = x_ref[...]                                         # (TN, C, HW), native dtype
    mx = jnp.max(x, axis=-1)                               # (TN, C) adaptive max pool
    av = jnp.sum(x, axis=-1, dtype=jnp.float32) * inv_hw   # (TN, C) f32 accumulate
    o_ref[:, :c] = mx.astype(o_ref.dtype)                  # max channels first
    o_ref[:, c:] = av.astype(o_ref.dtype)                  # avg channels second


def _pool_kernel_hw_blocked(x_ref, o_ref, max_acc, sum_acc, *, c, inv_hw, hw,
                            hw_block, needs_mask):
    """H*W split over an 'arbitrary' axis; f32 running max/sum accumulators in scratch."""
    k = pl.program_id(1)

    @pl.when(k == 0)
    def _init():
        max_acc[...] = jnp.full(max_acc.shape, -jnp.inf, max_acc.dtype)
        sum_acc[...] = jnp.zeros(sum_acc.shape, sum_acc.dtype)

    x = x_ref[...]                                         # (TN, C, HW_BLOCK)
    if needs_mask:
        lane = jax.lax.broadcasted_iota(jnp.int32, x.shape, x.ndim - 1)
        valid = (k * hw_block + lane) < hw
        if jnp.issubdtype(x.dtype, jnp.floating):
            neg_fill = jnp.asarray(-jnp.inf, x.dtype)
        else:
            neg_fill = jnp.asarray(jnp.iinfo(x.dtype).min, x.dtype)
        x_max = jnp.where(valid, x, neg_fill)
        x_sum = jnp.where(valid, x, jnp.zeros((), x.dtype))
    else:
        x_max = x
        x_sum = x
    max_acc[...] = jnp.maximum(max_acc[...],
                               jnp.max(x_max, axis=-1).astype(jnp.float32))
    sum_acc[...] = sum_acc[...] + jnp.sum(x_sum, axis=-1, dtype=jnp.float32)

    @pl.when(k == pl.num_programs(1) - 1)
    def _finalize():
        o_ref[:, :c] = max_acc[...].astype(o_ref.dtype)
        o_ref[:, c:] = (sum_acc[...] * inv_hw).astype(o_ref.dtype)


def adaptive_concat_pool2d(x, *, _force_budget=None):
    """x: (N, C, H, W) -> (N, 2C, 1, 1), matching torch.cat([maxpool, avgpool], 1)."""
    n, c, h, w = x.shape
    hw = h * w
    dtype = x.dtype
    itemsize = jnp.dtype(dtype).itemsize
    inv_hw = float(1.0 / hw)

    per_buf, vmem_default, min_steps = _force_budget or _vmem_budget()

    sub = _sublane_tile(dtype)
    pc = _round_up(c, sub)             # padded channels (sublane axis of input tile)
    phw = _round_up(hw, 128)           # padded spatial (lane axis of input tile)
    row_bytes = pc * phw * itemsize    # VMEM bytes of one (C, HW) row after tiling

    x_flat = x.reshape(n, c, hw)       # free: HW already contiguous in NCHW

    # Smallest legal batch block for the (N, 2C) output (second-minor block dim must
    # be a multiple of 8 or the full batch extent).
    min_legal_tn = n if n <= 8 else 8
    single_pass = (per_buf // row_bytes) >= min_legal_tn

    if single_pass:
        # ---- Path 1: full H*W per block, single 'parallel' grid axis over batch. ----
        tn_cap = min(per_buf // row_bytes, n)
        if min_steps > 1:
            tn_cap = min(tn_cap, -(-n // min_steps))   # feed both v7x TensorCores
        if n <= 8 or tn_cap >= n:
            tn = n
        else:
            tn = max(8, (tn_cap // 8) * 8)
            # Prefer a multiple of 8 that divides N (no wasted rows in the last block),
            # but never shrink the tile by more than 2x for it.
            d = tn
            while d >= 8:
                if n % d == 0:
                    if d * 2 >= tn:
                        tn = d
                    break
                d -= 8
        grid = (pl.cdiv(n, tn),)
        in_specs = [pl.BlockSpec((tn, c, hw), lambda i: (i, 0, 0))]
        out_specs = pl.BlockSpec((tn, 2 * c), lambda i: (i, 0))
        scratch_shapes = []
        kernel = functools.partial(_pool_kernel_full, c=c, inv_hw=inv_hw)
        dim_sem = ("parallel",)
        in_tile = tn * pc * phw * itemsize
        scratch_bytes = 0
    else:
        # ---- Path 2: a full row exceeds the buffer budget -> block H*W with running
        # accumulators; grid = (batch 'parallel', HW 'arbitrary'). ----
        tn = min_legal_tn
        hw_block = (per_buf // max(tn * pc * itemsize, 1)) // 128 * 128
        hw_block = max(128, min(hw_block, phw))
        # TODO(synk): for extreme C (tn * pc * 128 bytes > budget) add a channel-block
        # grid axis instead of letting the tile exceed the nominal per-buffer budget.
        grid = (pl.cdiv(n, tn), pl.cdiv(hw, hw_block))
        in_specs = [pl.BlockSpec((tn, c, hw_block), lambda i, k: (i, 0, k))]
        out_specs = pl.BlockSpec((tn, 2 * c), lambda i, k: (i, 0))
        scratch_shapes = [pltpu.VMEM((tn, c), jnp.float32),
                          pltpu.VMEM((tn, c), jnp.float32)]
        kernel = functools.partial(
            _pool_kernel_hw_blocked, c=c, inv_hw=inv_hw, hw=hw,
            hw_block=hw_block, needs_mask=(hw % hw_block != 0))
        dim_sem = ("parallel", "arbitrary")
        in_tile = tn * pc * hw_block * itemsize
        scratch_bytes = 2 * _round_up(tn, 8) * _round_up(c, 128) * 4

    out_tile = _round_up(tn, 8) * _round_up(2 * c, 128) * itemsize
    vmem_limit = int(max(vmem_default,
                         2 * in_tile + 2 * out_tile + scratch_bytes + (2 << 20)))

    cost = pl.CostEstimate(
        flops=2 * n * c * hw,                                # one max + one add / element
        bytes_accessed=n * c * hw * itemsize + n * 2 * c * itemsize,
        transcendentals=0,
    )

    out = pl.pallas_call(
        kernel,
        out_shape=jax.ShapeDtypeStruct((n, 2 * c), dtype),
        grid_spec=pltpu.PrefetchScalarGridSpec(
            num_scalar_prefetch=0,
            grid=grid,
            in_specs=in_specs,
            out_specs=out_specs,
            scratch_shapes=scratch_shapes,
        ),
        compiler_params=pltpu.CompilerParams(
            dimension_semantics=dim_sem,
            vmem_limit_bytes=vmem_limit,
        ),
        cost_estimate=cost,
    )(x_flat)

    # (N, 2C): max channels first, avg second (torch order) -> (N, 2C, 1, 1).
    return out.reshape(n, 2 * c, 1, 1)


if __name__ == "__main__":
    root = jax.random.PRNGKey(0)
    k1, k3, k4 = jax.random.split(root, 3)

    def ref_pool(x):
        return jnp.concatenate(
            [jnp.max(x, axis=(2, 3), keepdims=True),
             jnp.mean(x, axis=(2, 3), keepdims=True)], axis=1)

    # 1) Default path: full-HW rows, 'parallel' grid over batch.
    x1 = jax.random.normal(k1, (2, 4, 16, 16), dtype=jnp.float32)
    y1 = adaptive_concat_pool2d(x1)
    jax.block_until_ready(y1)
    assert y1.shape == (2, 8, 1, 1), y1.shape
    assert jnp.allclose(y1, ref_pool(x1), atol=1e-5, rtol=1e-5), "path-1 mismatch"

    # 2) HW-blocked accumulator path (forced via a tiny per-buffer budget).
    y2 = adaptive_concat_pool2d(x1, _force_budget=(4096, 8 * 1024 * 1024, 1))
    jax.block_until_ready(y2)
    assert jnp.allclose(y2, ref_pool(x1), atol=1e-5, rtol=1e-5), "path-2 mismatch"

    # 3) HW-blocked path with a masked partial HW block (HW=100, not a lane multiple).
    x3 = jax.random.normal(k3, (3, 5, 10, 10), dtype=jnp.float32)
    y3 = adaptive_concat_pool2d(x3, _force_budget=(2048, 8 * 1024 * 1024, 1))
    jax.block_until_ready(y3)
    assert y3.shape == (3, 10, 1, 1), y3.shape
    assert jnp.allclose(y3, ref_pool(x3), atol=1e-5, rtol=1e-5), "masked path mismatch"

    # 4) Partial final batch block (no host-side padding) on the full-HW path.
    x4 = jax.random.normal(k4, (10, 4, 16, 16), dtype=jnp.float32)
    y4 = adaptive_concat_pool2d(
        x4, _force_budget=(32 * 1024 * 1024, 96 * 1024 * 1024, 4))
    jax.block_until_ready(y4)
    assert y4.shape == (10, 8, 1, 1), y4.shape
    assert jnp.allclose(y4, ref_pool(x4), atol=1e-5, rtol=1e-5), "partial-batch mismatch"

    print("KERNEL_OK")
</pallas_src>

<mosaic_0001>
module attributes {stable_mosaic.version = 11 : i64} {
  func.func @_pool_kernel_full(%arg0: i32, %arg1: memref<2x4x256xf32, #tpu.memory_space<vmem>>, %arg2: memref<2x8xf32, #tpu.memory_space<vmem>>) attributes {dimension_semantics = [#tpu.dimension_semantics<parallel>], iteration_bounds = array<i64: 1>, scalar_prefetch = 0 : i64, scratch_operands = 0 : i64, tpu.core_type = #tpu.core_type<tc>, window_params = [{transform_indices = @transform_0, window_bounds = array<i64: 2, 4, 256>}, {transform_indices = @transform_1, window_bounds = array<i64: 2, 8>}]} {
    %c0 = arith.constant 0 : index
    %c0_0 = arith.constant 0 : index
    %c0_1 = arith.constant 0 : index
    %0 = vector.load %arg1[%c0, %c0_0, %c0_1] : memref<2x4x256xf32, #tpu.memory_space<vmem>>, vector<2x4x256xf32>
    %cst = arith.constant dense<0xFF800000> : vector<2x4xf32>
    %1 = vector.multi_reduction <maximumf>, %0, %cst [2] : vector<2x4x256xf32> to vector<2x4xf32>
    %cst_2 = arith.constant dense<0.000000e+00> : vector<2x4xf32>
    %2 = vector.multi_reduction <add>, %0, %cst_2 [2] : vector<2x4x256xf32> to vector<2x4xf32>
    %cst_3 = arith.constant 3.906250e-03 : f32
    %3 = vector.broadcast %cst_3 : f32 to vector<2x4xf32>
    %4 = arith.mulf %2, %3 : vector<2x4xf32>
    %c0_4 = arith.constant 0 : index
    %c0_5 = arith.constant 0 : index
    %5 = vector.load %arg2[%c0_4, %c0_5] : memref<2x8xf32, #tpu.memory_space<vmem>>, vector<2x4xf32>
    tpu.vector_store %arg2[%c0_4, %c0_5], %1 {strides = array<i32>} : memref<2x8xf32, #tpu.memory_space<vmem>>, vector<2x4xf32>,
    %c0_6 = arith.constant 0 : index
    %c4 = arith.constant 4 : index
    %6 = vector.load %arg2[%c0_6, %c4] : memref<2x8xf32, #tpu.memory_space<vmem>>, vector<2x4xf32>
    tpu.vector_store %arg2[%c0_6, %c4], %4 {strides = array<i32>} : memref<2x8xf32, #tpu.memory_space<vmem>>, vector<2x4xf32>,
    return
  }
  func.func @transform_0(%arg0: i32) -> (i32, i32, i32) {
    %c0_i32 = arith.constant 0 : i32
    %c0_i32_0 = arith.constant 0 : i32
    %c0_i32_1 = arith.constant 0 : i32
    return %arg0, %c0_i32, %c0_i32_0 : i32, i32, i32
  }
  func.func @transform_1(%arg0: i32) -> (i32, i32) {
    %c0_i32 = arith.constant 0 : i32
    %c0_i32_0 = arith.constant 0 : i32
    return %arg0, %c0_i32 : i32, i32
  }
}

</mosaic_0001>

<bundles_post_ra>
// kernel: tpu_custom_call.1
= control target key start
LH: loop header
LB: loop body
LE: loop exit
PB: predicated region body
PF: predicated region fallthrough
CT: control target
= control target key end

     0   :  { %6 = vsyncpa [#allocation3], 0  ;;  %s197_s0 = inlined_call_operand.hbm [shape: f32[2,4,256], index: 0, kind: input, shape index: {}]   ;;  %s198_s1 = inlined_call_operand.hbm [shape: f32[2,8], index: 1, kind: output, shape index: {}]  }
   0x1   :  { %7 = vsyncpa [#allocation4], 0  ;;  %s12_s8 = sshll.u32 %s197_s0, 4  ;;  %s167_s9 = smov [#allocation2]   ;;  %s13_s8 = int_to_ptr.hbm [resolvable:$true] %s12_s8 }
   0x2   :  { %s14_s10 = sshll.u32 %s167_s9, 4  ;;  %s168_s11 = smov 128   ;;  %s15_s10 = int_to_ptr.vmem [resolvable:$true] %s14_s10 }
   0x3   :  { %s169_s12 = smov 8  }
   0x4   :  { %20 = dma.hbm_to_vmem [thread:$0]  %s13_s8, 256, %s15_s10, [#allocation3], %s168_s11, %s168_s11, %s169_s12  }
   0x5   :  { %163 = dma.done.wait [#allocation3], 256  }
   0x6   :  { %164 = vsyncadd [#allocation3], 4294967040  ;;  %v25_v0 = vld [vmem:[#allocation2] sm:$0xff]  ;;  %v26_v1 = vld [vmem:[#allocation2 + $0x8] sm:$0xff]  ;;  %vm40_vm0 = vcmask 1043456   ;;  %v76_v22 = vlaneseq  ;;  %vm80_vm1 = vcmask 1041409  }
   0x7   :  { %29 = vst [vmem:[#allocation1] ss:$2 sm:$0xff] %v25_v0  ;;  %vm83_vm2 = vcmask 25600   ;;  %s170_s0 = smov [#allocation5]   ;;  %s101_s16 = sshll.u32 %s198_s1, 4  ;;  %vm92_vm3 = vcmask 58400   ;;  %s102_s16 = int_to_ptr.hbm [resolvable:$true] %s101_s16 }
   0x8   :  { %33 = vst [vmem:[#allocation1 + $0x10] ss:$2 sm:$0xff] %v26_v1  ;;  %v77_v24 = vand.u32 127, %v76_v22  ;;  %s99_s13 = sshll.u32 %s170_s0, 4  ;;  %s100_s13 = int_to_ptr.vmem [resolvable:$true] %s99_s13 }
   0xa   :  { %v87_v30 = vadd.s32 4294967292, %v77_v24 }
   0xe   :  { %v30_v2 = vld.sshfl [vmem:[#allocation1] sm:$0xff pattern:$0x75316420]  ;;  %v31_v3 = vld.sshfl [vmem:[#allocation1 + $0x8] sm:$0xff pattern:$0x75316420] }
   0xf   :  { %v41_v4 = vsel %vm40_vm0, %v30_v2, -inf  ;;  %v42_v5 = vsel %vm40_vm0, %v31_v3, -inf  ;;  %51 = vst [vmem:[#allocation1] ss:$2 sm:$0xff] %v25_v0 }
  0x10   :  { %v43_v6 = vmax.f32 %v41_v4, %v42_v5  ;;  %v34_v7 = vld.sshfl [vmem:[#allocation1 + $0x10] sm:$0xff pattern:$0x75316420]  ;;  %v35_v8 = vld.sshfl [vmem:[#allocation1 + $0x18] sm:$0xff pattern:$0x75316420] }
  0x11   :  { %55 = vst [vmem:[#allocation1 + $0x10] ss:$2 sm:$0xff] %v26_v1  ;;  %v46_v9 = vsel %vm40_vm0, %v34_v7, -inf  ;;  %v47_v10 = vsel %vm40_vm0, %v35_v8, -inf }
  0x12   :  { %44 = vmax.xlane.f32.xlu1 %v43_v6  ;;  %v48_v13 = vmax.f32 %v46_v9, %v47_v10 }
  0x16   :  { %v52_v11 = vld.sshfl [vmem:[#allocation1] sm:$0xff pattern:$0x75316420]  ;;  %v53_v12 = vld.sshfl [vmem:[#allocation1 + $0x8] sm:$0xff pattern:$0x75316420] }
  0x17   :  { %v62_v14 = vsel %vm40_vm0, %v52_v11, 0.0  ;;  %v63_v15 = vsel %vm40_vm0, %v53_v12, 0.0 }
  0x18   :  { %v64_v16 = vadd.f32 %v63_v15, %v62_v14  ;;  %v56_v17 = vld.sshfl [vmem:[#allocation1 + $0x10] sm:$0xff pattern:$0x75316420]  ;;  %v57_v18 = vld.sshfl [vmem:[#allocation1 + $0x18] sm:$0xff pattern:$0x75316420] }
  0x19   :  { %v67_v19 = vsel %vm40_vm0, %v56_v17, 0.0  ;;  %v68_v20 = vsel %vm40_vm0, %v57_v18, 0.0 }
  0x1a   :  { %65 = vadd.xlane.f32.xlu0 %v64_v16  ;;  %49 = vmax.xlane.f32.xlu1 %v48_v13  ;;  %v69_v21 = vadd.f32 %v68_v20, %v67_v19 }
  0x22   :  { %70 = vadd.xlane.f32.xlu0 %v69_v21 }
  0x85   :  { %v45_v23 = vpop.xlane.xlu1 %44 }
  0x86   :  { %v78_v25 = vperm.slane %v45_v23, %v77_v24 }
  0x8d   :  { %v66_v26 = vpop.xlane.xlu0 %65  ;;  %v50_v27 = vpop.xlane.xlu1 %49 }
  0x8e   :  { %v79_v28 = vperm.slane %v50_v27, %v77_v24  ;;  %v72_v31 = vmul.f32 0.00390625, %v66_v26 }
  0x90   :  { %v81_v29 = vsel %vm80_vm1, %v79_v28, %v78_v25  ;;  %v88_v34 = vperm.slane %v72_v31, %v87_v30 }
  0x91   :  { %84 = vst.msk [vmem:[#allocation5] sm:$0x3] %vm83_vm2, %v81_v29 }
  0x95   :  { %v71_v32 = vpop.xlane.xlu0 %70 }
  0x96   :  { %v73_v33 = vmul.f32 0.00390625, %v71_v32 }
  0x98   :  { %v89_v35 = vperm.slane %v73_v33, %v87_v30 }
  0x9a   :  { %v90_v36 = vsel %vm80_vm1, %v89_v35, %v88_v34 }
  0x9b   :  { %93 = vst.msk [vmem:[#allocation5] sm:$0x3] %vm92_vm3, %v90_v36 }
  0x9c   :  { %104 = dma.vmem_to_hbm [thread:$0]  %s100_s13, 32, %s102_s16, [#allocation4]  }
  0x9d   :  { %165 = dma.done.wait [#allocation4], 32  }
  0x9e   :  { %166 = vsyncadd [#allocation4], 4294967264 }
  0x9f   :  { %109 = vsyncpa [#allocation3], 1 }
  0xa0   :  { %110 = vsyncpa [#allocation4], 1 }

</bundles_post_ra>
